<compile_context>
chip_gen: v7x
topology: tpu7x:2x2x1
jax: 0.10.0
libtpu: 0.0.40
codegen_flags: <defaults>
</compile_context>

<pallas_src>
import functools

import jax
import jax.numpy as jnp
from jax import lax
from jax.experimental import pallas as pl
from jax.experimental.pallas import tpu as pltpu

EPS = 1e-5

SUBLANE = 8
LANE = 128
ROW_TILE_MAX = 4096              # caps lane-padding waste of the narrow side buffers
PASS1_TARGET_BYTES = 8 << 20     # pass 1 streams only x  -> bigger blocks
PASS2_TARGET_BYTES = 4 << 20     # pass 2 streams x in + out (2 arrays x 2 buffers)


def _round_up(v, m):
    return ((v + m - 1) // m) * m


def _round_down(v, m):
    return (v // m) * m


def _choose_tiles(rows, cols, itemsize, target_bytes):
    """Pick (row_tile, col_tile) sized by padded VMEM bytes, dtype aware."""
    # Column tile: full extent when it fits the byte budget at the minimum
    # 8-row tile (legal even if not a multiple of 128); otherwise lane-dense.
    max_col_tile = max(LANE, _round_down(target_bytes // (SUBLANE * itemsize), LANE))
    col_tile = cols if cols <= max_col_tile else max_col_tile
    padded_cols = _round_up(col_tile, LANE)

    if rows <= SUBLANE:
        row_tile = rows                      # full-extent block (legal for any size)
    else:
        target_rows = max(SUBLANE, target_bytes // (padded_cols * itemsize))
        row_tile = min(_round_down(target_rows, SUBLANE), ROW_TILE_MAX)
        # Megacore (v7x): make sure the "parallel" row axis has >= 2 blocks.
        half_rows = _round_up((rows + 1) // 2, SUBLANE)
        row_tile = max(SUBLANE, min(row_tile, half_rows))
    return row_tile, col_tile


def _padded_bytes(r, c, itemsize):
    """VMEM footprint of an (r, c) buffer, accounting for (8, 128) tile padding."""
    return _round_up(max(r, 1), SUBLANE) * _round_up(max(c, 1), LANE) * itemsize


def _vmem_limit(per_pass_bytes):
    """Generation-aware scoped-VMEM limit: never below the 32 MiB platform default,
    never above 75% of physical VMEM (64 MiB on v7x, 128 MiB on v5e/v6e)."""
    cap = 48 << 20
    try:
        phys = getattr(pltpu.get_tpu_info(), "vmem_capacity_bytes", None)
        if phys:
            cap = int(0.75 * phys)
    except Exception:
        pass
    return int(min(max(per_pass_bytes + (2 << 20), 32 << 20), cap))


# ------------------------------------------------------------------ pass 1
def _stats_kernel(x_ref, stat_ref, sum_acc, sq_acc, *, cols, col_tile):
    """Fused per-row sum / sum-of-squares over the lane (H*W) axis.

    Accumulates in VMEM scratch; stores the packed (row_tile, 2) stats block
    once, at the last column step.
    """
    j = pl.program_id(1)

    @pl.when(j == 0)
    def _():
        sum_acc[...] = jnp.zeros_like(sum_acc)
        sq_acc[...] = jnp.zeros_like(sq_acc)

    x = x_ref[...].astype(jnp.float32)                      # (row_tile, col_tile)
    if cols % col_tile != 0:
        # Partial last column tile: out-of-bounds lanes are garbage -> mask to 0.
        lane = lax.broadcasted_iota(jnp.int32, x.shape, 1)
        x = jnp.where(j * col_tile + lane < cols, x, 0.0)

    sum_acc[...] += jnp.sum(x, axis=-1, keepdims=True)
    sq_acc[...] += jnp.sum(x * x, axis=-1, keepdims=True)

    @pl.when(j == pl.num_programs(1) - 1)
    def _():
        stat_ref[:, 0:1] = sum_acc[...]
        stat_ref[:, 1:2] = sq_acc[...]


# ------------------------------------------------------------------ pass 2
def _apply_kernel(x_ref, g_ref, o_ref):
    """Elementwise recalibration out = x * g, multiplied in f32 then cast."""
    o_ref[...] = (x_ref[...].astype(jnp.float32) * g_ref[...]).astype(o_ref.dtype)


@jax.jit
def srm_layer_pallas(x, cfc, bn_weight, bn_bias):
    """x: (N, C, H, W); cfc: (C, 2); bn_weight / bn_bias: (C,)."""
    N, C, H, W = x.shape
    rows, cols = N * C, H * W
    itemsize = jnp.dtype(x.dtype).itemsize

    x2 = x.reshape(rows, cols)                              # free (row-major view)

    # ---- pass 1: streaming fused sum / sum-of-squares reduction ----
    rt1, ct1 = _choose_tiles(rows, cols, itemsize, PASS1_TARGET_BYTES)
    grid1 = (pl.cdiv(rows, rt1), pl.cdiv(cols, ct1))
    vmem1 = _vmem_limit(2 * _padded_bytes(rt1, ct1, itemsize)
                        + 4 * _padded_bytes(rt1, 1, 4))

    stats = pl.pallas_call(
        functools.partial(_stats_kernel, cols=cols, col_tile=ct1),
        out_shape=jax.ShapeDtypeStruct((rows, 2), jnp.float32),
        grid=grid1,
        in_specs=[pl.BlockSpec((rt1, ct1), lambda i, j: (i, j))],
        out_specs=pl.BlockSpec((rt1, 2), lambda i, j: (i, 0)),
        scratch_shapes=[pltpu.VMEM((rt1, 1), jnp.float32),
                        pltpu.VMEM((rt1, 1), jnp.float32)],
        compiler_params=pltpu.CompilerParams(
            dimension_semantics=("parallel", "arbitrary"),
            vmem_limit_bytes=vmem1),
    )(x2)

    # ---- tiny O(N*C) gate in plain JAX: style integration + BN + sigmoid ----
    hw = float(cols)
    s = stats[:, 0].reshape(N, C)
    sq = stats[:, 1].reshape(N, C)
    mean = s * (1.0 / hw)
    # Unbiased spatial variance (torch.var default) via fused sums; clamp guards
    # tiny negative cancellation.  NOTE: hw == 1 divides by zero (NaN), exactly
    # like torch.var(unbiased=True).
    # TODO(synk): switch to shifted-mean / Welford block merging if tighter f32
    # tolerances are needed for very large H*W.
    var = jnp.maximum((sq - hw * mean * mean) / (hw - 1.0), 0.0)
    std = jnp.sqrt(var + EPS)

    cfc32 = cfc.astype(jnp.float32)
    z = mean * cfc32[:, 0][None, :] + std * cfc32[:, 1][None, :]        # (N, C)
    bmu = jnp.mean(z, axis=0, keepdims=True)                            # BN batch stats
    d = z - bmu
    bvar = jnp.mean(d * d, axis=0, keepdims=True)                       # biased var
    g = jax.nn.sigmoid(d * lax.rsqrt(bvar + EPS)
                       * bn_weight.astype(jnp.float32)[None, :]
                       + bn_bias.astype(jnp.float32)[None, :])
    g_rows = g.reshape(rows, 1)                                         # f32, tiny

    # ---- pass 2: lane-dense elementwise apply out = x * g ----
    rt2, ct2 = _choose_tiles(rows, cols, itemsize, PASS2_TARGET_BYTES)
    grid2 = (pl.cdiv(rows, rt2), pl.cdiv(cols, ct2))
    vmem2 = _vmem_limit(4 * _padded_bytes(rt2, ct2, itemsize)
                        + 2 * _padded_bytes(rt2, 1, 4))

    out2 = pl.pallas_call(
        _apply_kernel,
        out_shape=jax.ShapeDtypeStruct((rows, cols), x.dtype),
        grid=grid2,
        in_specs=[pl.BlockSpec((rt2, ct2), lambda i, j: (i, j)),
                  pl.BlockSpec((rt2, 1), lambda i, j: (i, 0))],
        out_specs=pl.BlockSpec((rt2, ct2), lambda i, j: (i, j)),
        compiler_params=pltpu.CompilerParams(
            dimension_semantics=("parallel", "parallel"),
            vmem_limit_bytes=vmem2),
    )(x2, g_rows)

    return out2.reshape(N, C, H, W)


def srm_layer_reference(x, cfc, bn_weight, bn_bias):
    """Pure-JAX reference matching the PyTorch module (training-mode BN)."""
    N, C, H, W = x.shape
    xf = x.reshape(N, C, -1)
    mean = xf.mean(axis=2)
    var = xf.var(axis=2, ddof=1) + EPS
    std = jnp.sqrt(var)
    z = mean * cfc[:, 0][None, :] + std * cfc[:, 1][None, :]            # (N, C)
    bmu = z.mean(axis=0)
    bvar = z.var(axis=0)                                                # biased
    z_hat = (z - bmu) / jnp.sqrt(bvar + EPS) * bn_weight + bn_bias
    g = jax.nn.sigmoid(z_hat)
    return x * g[:, :, None, None]


if __name__ == "__main__":
    # Small shapes consistent with the module's NCHW conv-style input.
    N, C, H, W = 2, 4, 16, 16

    key = jax.random.PRNGKey(0)
    kx, kc, kw, kb = jax.random.split(key, 4)

    x = jax.random.normal(kx, (N, C, H, W), dtype=jnp.float32)

    # Deterministic, non-degenerate parameters.  (The PyTorch module initializes
    # cfc=0 / BN weight=1, bias=0, which would make the forward trivially 0.5*x.)
    cfc = 0.5 * jax.random.normal(kc, (C, 2), dtype=jnp.float32)
    bn_weight = 1.0 + 0.1 * jax.random.normal(kw, (C,), dtype=jnp.float32)
    bn_bias = 0.1 * jax.random.normal(kb, (C,), dtype=jnp.float32)

    out = jax.block_until_ready(srm_layer_pallas(x, cfc, bn_weight, bn_bias))
    ref = srm_layer_reference(x, cfc, bn_weight, bn_bias)

    assert out.shape == (N, C, H, W)
    assert jnp.allclose(out, ref, atol=2e-5, rtol=2e-5), "mismatch vs reference"

    print("KERNEL_OK")
</pallas_src>

<mosaic_0001>
module attributes {stable_mosaic.version = 11 : i64} {
  func.func @_stats_kernel(%arg0: i32, %arg1: i32, %arg2: memref<8x256xf32, #tpu.memory_space<vmem>>, %arg3: memref<8x2xf32, #tpu.memory_space<vmem>>, %arg4: memref<8x1xf32, #tpu.memory_space<vmem>>, %arg5: memref<8x1xf32, #tpu.memory_space<vmem>>) attributes {dimension_semantics = [#tpu.dimension_semantics<parallel>, #tpu.dimension_semantics<arbitrary>], iteration_bounds = array<i64: 1, 1>, scalar_prefetch = 0 : i64, scratch_operands = 2 : i64, tpu.core_type = #tpu.core_type<tc>, window_params = [{transform_indices = @transform_0, window_bounds = array<i64: 8, 256>}, {transform_indices = @transform_1, window_bounds = array<i64: 8, 2>}]} {
    %c0_i32 = arith.constant 0 : i32
    %0 = arith.cmpi eq, %arg1, %c0_i32 : i32
    %1 = arith.extui %0 : i1 to i32
    %c0_i32_0 = arith.constant 0 : i32
    %2 = arith.cmpi ne, %1, %c0_i32_0 : i32
    scf.if %2 {
      %cst_13 = arith.constant 0.000000e+00 : f32
      %18 = vector.broadcast %cst_13 : f32 to vector<8x1xf32>
      %c0_14 = arith.constant 0 : index
      %c0_15 = arith.constant 0 : index
      %19 = vector.load %arg4[%c0_14, %c0_15] : memref<8x1xf32, #tpu.memory_space<vmem>>, vector<8x1xf32>
      tpu.vector_store %arg4[%c0_14, %c0_15], %18 {strides = array<i32>} : memref<8x1xf32, #tpu.memory_space<vmem>>, vector<8x1xf32>,
      %cst_16 = arith.constant 0.000000e+00 : f32
      %20 = vector.broadcast %cst_16 : f32 to vector<8x1xf32>
      %c0_17 = arith.constant 0 : index
      %c0_18 = arith.constant 0 : index
      %21 = vector.load %arg5[%c0_17, %c0_18] : memref<8x1xf32, #tpu.memory_space<vmem>>, vector<8x1xf32>
      tpu.vector_store %arg5[%c0_17, %c0_18], %20 {strides = array<i32>} : memref<8x1xf32, #tpu.memory_space<vmem>>, vector<8x1xf32>,
    } else {
    }
    %c0 = arith.constant 0 : index
    %c0_1 = arith.constant 0 : index
    %3 = vector.load %arg2[%c0, %c0_1] : memref<8x256xf32, #tpu.memory_space<vmem>>, vector<8x256xf32>
    %c0_2 = arith.constant 0 : index
    %c0_3 = arith.constant 0 : index
    %4 = vector.load %arg4[%c0_2, %c0_3] : memref<8x1xf32, #tpu.memory_space<vmem>>, vector<8x1xf32>
    %cst = arith.constant dense<0.000000e+00> : vector<8xf32>
    %5 = vector.multi_reduction <add>, %3, %cst [1] : vector<8x256xf32> to vector<8xf32>
    %6 = vector.shape_cast %5 : vector<8xf32> to vector<8x1xf32>
    %7 = arith.addf %4, %6 : vector<8x1xf32>
    %c0_4 = arith.constant 0 : index
    %c0_5 = arith.constant 0 : index
    %8 = vector.load %arg4[%c0_4, %c0_5] : memref<8x1xf32, #tpu.memory_space<vmem>>, vector<8x1xf32>
    tpu.vector_store %arg4[%c0_4, %c0_5], %7 {strides = array<i32>} : memref<8x1xf32, #tpu.memory_space<vmem>>, vector<8x1xf32>,
    %c0_6 = arith.constant 0 : index
    %c0_7 = arith.constant 0 : index
    %9 = vector.load %arg5[%c0_6, %c0_7] : memref<8x1xf32, #tpu.memory_space<vmem>>, vector<8x1xf32>
    %10 = arith.mulf %3, %3 : vector<8x256xf32>
    %cst_8 = arith.constant dense<0.000000e+00> : vector<8xf32>
    %11 = vector.multi_reduction <add>, %10, %cst_8 [1] : vector<8x256xf32> to vector<8xf32>
    %12 = vector.shape_cast %11 : vector<8xf32> to vector<8x1xf32>
    %13 = arith.addf %9, %12 : vector<8x1xf32>
    %c0_9 = arith.constant 0 : index
    %c0_10 = arith.constant 0 : index
    %14 = vector.load %arg5[%c0_9, %c0_10] : memref<8x1xf32, #tpu.memory_space<vmem>>, vector<8x1xf32>
    tpu.vector_store %arg5[%c0_9, %c0_10], %13 {strides = array<i32>} : memref<8x1xf32, #tpu.memory_space<vmem>>, vector<8x1xf32>,
    %c0_i32_11 = arith.constant 0 : i32
    %15 = arith.cmpi eq, %arg1, %c0_i32_11 : i32
    %16 = arith.extui %15 : i1 to i32
    %c0_i32_12 = arith.constant 0 : i32
    %17 = arith.cmpi ne, %16, %c0_i32_12 : i32
    scf.if %17 {
      %c0_13 = arith.constant 0 : index
      %c0_14 = arith.constant 0 : index
      %18 = vector.load %arg4[%c0_13, %c0_14] : memref<8x1xf32, #tpu.memory_space<vmem>>, vector<8x1xf32>
      %c0_15 = arith.constant 0 : index
      %c0_16 = arith.constant 0 : index
      %19 = vector.load %arg3[%c0_15, %c0_16] : memref<8x2xf32, #tpu.memory_space<vmem>>, vector<8x1xf32>
      tpu.vector_store %arg3[%c0_15, %c0_16], %18 {strides = array<i32>} : memref<8x2xf32, #tpu.memory_space<vmem>>, vector<8x1xf32>,
      %c0_17 = arith.constant 0 : index
      %c0_18 = arith.constant 0 : index
      %20 = vector.load %arg5[%c0_17, %c0_18] : memref<8x1xf32, #tpu.memory_space<vmem>>, vector<8x1xf32>
      %c0_19 = arith.constant 0 : index
      %c1 = arith.constant 1 : index
      %21 = vector.load %arg3[%c0_19, %c1] : memref<8x2xf32, #tpu.memory_space<vmem>>, vector<8x1xf32>
      tpu.vector_store %arg3[%c0_19, %c1], %20 {strides = array<i32>} : memref<8x2xf32, #tpu.memory_space<vmem>>, vector<8x1xf32>,
    } else {
    }
    return
  }
  func.func @transform_0(%arg0: i32, %arg1: i32) -> (i32, i32) {
    %c0_i32 = arith.constant 0 : i32
    return %arg0, %arg1 : i32, i32
  }
  func.func @transform_1(%arg0: i32, %arg1: i32) -> (i32, i32) {
    %c0_i32 = arith.constant 0 : i32
    %c0_i32_0 = arith.constant 0 : i32
    return %arg0, %c0_i32 : i32, i32
  }
}

module attributes {stable_mosaic.version = 11 : i64} {
  func.func @_apply_kernel(%arg0: i32, %arg1: i32, %arg2: memref<8x256xf32, #tpu.memory_space<vmem>>, %arg3: memref<8x1xf32, #tpu.memory_space<vmem>>, %arg4: memref<8x256xf32, #tpu.memory_space<vmem>>) attributes {dimension_semantics = [#tpu.dimension_semantics<parallel>, #tpu.dimension_semantics<parallel>], iteration_bounds = array<i64: 1, 1>, scalar_prefetch = 0 : i64, scratch_operands = 0 : i64, tpu.core_type = #tpu.core_type<tc>, window_params = [{transform_indices = @transform_0, window_bounds = array<i64: 8, 256>}, {transform_indices = @transform_1, window_bounds = array<i64: 8, 1>}, {transform_indices = @transform_2, window_bounds = array<i64: 8, 256>}]} {
    %c0 = arith.constant 0 : index
    %c0_0 = arith.constant 0 : index
    %0 = vector.load %arg2[%c0, %c0_0] : memref<8x256xf32, #tpu.memory_space<vmem>>, vector<8x256xf32>
    %c0_1 = arith.constant 0 : index
    %c0_2 = arith.constant 0 : index
    %1 = vector.load %arg3[%c0_1, %c0_2] : memref<8x1xf32, #tpu.memory_space<vmem>>, vector<8x1xf32>
    %2 = vector.broadcast %1 : vector<8x1xf32> to vector<8x256xf32>
    %3 = arith.mulf %0, %2 : vector<8x256xf32>
    %c0_3 = arith.constant 0 : index
    %c0_4 = arith.constant 0 : index
    %4 = vector.load %arg4[%c0_3, %c0_4] : memref<8x256xf32, #tpu.memory_space<vmem>>, vector<8x256xf32>
    tpu.vector_store %arg4[%c0_3, %c0_4], %3 {strides = array<i32>} : memref<8x256xf32, #tpu.memory_space<vmem>>, vector<8x256xf32>,
    return
  }
  func.func @transform_0(%arg0: i32, %arg1: i32) -> (i32, i32) {
    %c0_i32 = arith.constant 0 : i32
    return %arg0, %arg1 : i32, i32
  }
  func.func @transform_1(%arg0: i32, %arg1: i32) -> (i32, i32) {
    %c0_i32 = arith.constant 0 : i32
    %c0_i32_0 = arith.constant 0 : i32
    return %arg0, %c0_i32 : i32, i32
  }
  func.func @transform_2(%arg0: i32, %arg1: i32) -> (i32, i32) {
    %c0_i32 = arith.constant 0 : i32
    return %arg0, %arg1 : i32, i32
  }
}

</mosaic_0001>

<bundles_post_ra>
// kernel: squeeze.5
= control target key start
LH: loop header
LB: loop body
LE: loop exit
PB: predicated region body
PF: predicated region fallthrough
CT: control target
= control target key end

     0   :  { %vm7_vm0 = vcmask 31744   ;;  %s39_s0 = inlined_call_operand.vmem [shape: f32[8], index: 0, kind: input, shape index: {}]   ;;  %s40_s1 = inlined_call_operand.vmem [shape: f32[2,4], index: 1, kind: output, shape index: {}]  }
   0x1   :  { %v4_v0 = vld [vmem:[%s39_s0] sm:$0x1]  ;;  %s22_s0 = smov 124  }
   0x2   :  { %5 = vst [vmem:[#allocation1] sm:$0x1] %v4_v0 }
   0x9   :  { %v9_v1 = vld [vmem:[#allocation1] sm:$0x1]  }
   0xa   :  { %v6_v2 = vld [vmem:[#allocation1] sm:$0x1]   ;;  %10 = vrot.lane.b32.xlu0 %v9_v1, %s22_s0 }
   0xb   :  { %8 = vst.msk [vmem:[#allocation0] sm:$0x1] %vm7_vm0, %v6_v2  }
  0x7c   :  { %v11_v3 = vpop.permute.xlu0 %10  }
  0x7d   :  { %14 = vst.msk [vmem:[#allocation0 + $0x1] sm:$0x1] %vm7_vm0, %v11_v3  }
  0x84   :  { %v18_v4 = vld [vmem:[#allocation0] sm:$0x3] }
  0x85   :  { %20 = vst [vmem:[%s40_s1] sm:$0x3] %v18_v4 }

// kernel: srm_layer_pallas.2
= control target key start
LH: loop header
LB: loop body
LE: loop exit
PB: predicated region body
PF: predicated region fallthrough
CT: control target
= control target key end

     0   :  { %vm12_vm0 = vcmask 7168   ;;  %v50_v2 = vmov 0.0   ;;  %vm42_vm1 = vcmask 15368   ;;  %s79_s0 = inlined_call_operand.vmem [shape: f32[8,256], index: 0, kind: input, shape index: {}]   ;;  %s80_s1 = inlined_call_operand.vmem [shape: f32[8,2], index: 1, kind: output, shape index: {}]  }
   0x1   :  { %v15_v0 = vld [vmem:[%s79_s0] sm:$0xff]  ;;  %v16_v1 = vld [vmem:[%s79_s0 + $0x8] sm:$0xff]  ;;  %14 = vst.msk [vmem:[#allocation3] sm:$0xff] %vm12_vm0, %v50_v2  ;;  %13 = vst.msk [vmem:[#allocation2] sm:$0xff] %vm12_vm0, %v50_v2  ;;  %s51_s0 = smov 1  }
   0x2   :  { %v25_v3 = vmul.f32 %v15_v0, %v15_v0  ;;  %v26_v4 = vmul.f32 %v16_v1, %v16_v1  ;;  %v18_v6 = vadd.f32 %v16_v1, %v15_v0 }
   0x4   :  { %v27_v5 = vadd.f32 %v26_v4, %v25_v3 }
   0x6   :  { %28 = vadd.xlane.f32.xlu0 %v27_v5 }
   0x8   :  { %v24_v7 = vld [vmem:[#allocation3] sm:$0xff]  ;;  %v17_v10 = vld [vmem:[#allocation2] sm:$0xff] }
   0xa   :  { %19 = vadd.xlane.f32.xlu0 %v18_v6 }
  0x93   :  { %v29_v8 = vpop.xlane.xlu0 %28 }
  0x94   :  { %v30_v9 = vadd.f32 %v29_v8, %v24_v7 }
  0x96   :  { %31 = vst.msk [vmem:[#allocation3] sm:$0xff] %vm12_vm0, %v30_v9 }
  0x97   :  { %v20_v11 = vpop.xlane.xlu0 %19 }
  0x98   :  { %v21_v12 = vadd.f32 %v20_v11, %v17_v10 }
  0x9a   :  { %23 = vst.msk [vmem:[#allocation2] sm:$0xff] %vm12_vm0, %v21_v12 }
  0x9d   :  { %v37_v13 = vld [vmem:[#allocation3] sm:$0xff] }
  0x9e   :  { %39 = vrot.lane.b32.xlu1 %v37_v13, %s51_s0 }
  0xa1   :  { %v35_v14 = vld [vmem:[#allocation2] sm:$0xff] }
  0xa2   :  { %36 = vst.msk [vmem:[%s80_s1] sm:$0xff] %vm12_vm0, %v35_v14 }
 0x110   :  { %v40_v15 = vpop.permute.xlu1 %39 }
 0x111   :  { %43 = vst.msk [vmem:[%s80_s1] sm:$0xff] %vm42_vm1, %v40_v15 }

// kernel: srm_layer_pallas.3
= control target key start
LH: loop header
LB: loop body
LE: loop exit
PB: predicated region body
PF: predicated region fallthrough
CT: control target
= control target key end

     0   :  { %v29_v0 = vmov 0   ;;  %s60_s1 = inlined_call_operand.vmem [shape: f32[8,1], index: 1, kind: input, shape index: {}]   ;;  %s61_s0 = inlined_call_operand.vmem [shape: f32[8,256], index: 0, kind: input, shape index: {}]   ;;  %s62_s2 = inlined_call_operand.vmem [shape: f32[8,256], index: 2, kind: output, shape index: {}]  }
   0x1   :  { %28 = vset.pattern.permute.xlu0 %v29_v0  ;;  %v13_v1 = vld [vmem:[%s60_s1] sm:$0xff]  ;;  %v12_v3 = vld [vmem:[%s61_s0 + $0x8] sm:$0xff] }
   0x2   :  { %16 = vperm.xlu0 %28, %v13_v1   ;;  %v11_v2 = vld [vmem:[%s61_s0] sm:$0xff] }
  0x81   :  { %v17_v4 = vpop.permute.xlu0 %16 }
  0x82   :  { %v19_v5 = vmul.f32 %v17_v4, %v11_v2  ;;  %v20_v6 = vmul.f32 %v17_v4, %v12_v3 }
  0x84   :  { %21 = vst [vmem:[%s62_s2] sm:$0xff] %v19_v5  ;;  %22 = vst [vmem:[%s62_s2 + $0x8] sm:$0xff] %v20_v6 }

</bundles_post_ra>
